<compile_context>
chip_gen: v6e
topology: v6e:2x2x1
jax: 0.10.0
libtpu: 0.0.40
codegen_flags: <defaults>
</compile_context>

<pallas_src>
import functools

import jax
import jax.numpy as jnp
from jax.experimental import pallas as pl
from jax.experimental.pallas import tpu as pltpu


def _conv_bn_relu_kernel(x_ref, w_ref, scale_ref, bias_ref, o_ref,
                         *, TH, Wo, KH, Coutp, row_align):
    # x_ref:     (Hp*Wo, KW*Cin)      bf16  kw-folded, row-flattened padded image
    # w_ref:     (KH, KW*Cin, Coutp)  bf16  folded conv weights (Cout lane-padded)
    # scale_ref: (1, Coutp)           f32   gamma / sqrt(var + eps)
    # bias_ref:  (1, Coutp)           f32   beta - mean * scale
    # o_ref:     (TH*Wo, Coutp)       f32   output row-tile
    r = pl.program_id(1)
    row0 = r * TH

    acc = None
    for kh in range(KH):                                   # static, unrolled (KH == 3)
        start = (row0 + kh) * Wo
        if row_align > 1:
            start = pl.multiple_of(start, row_align)
        patch = x_ref[pl.ds(start, TH * Wo), :]            # (TH*Wo, KW*Cin) bf16
        part = jnp.dot(patch, w_ref[kh],
                       preferred_element_type=jnp.float32)
        acc = part if acc is None else acc + part

    y = acc * scale_ref[...] + bias_ref[...]               # fused BN epilogue
    o_ref[...] = jnp.maximum(y, 0.0).astype(o_ref.dtype)


def _pick_row_tile(Ho, Wo, target_m=512):
    """Largest divisor th of Ho with th*Wo <= target_m and th*Wo % 8 == 0."""
    best = None
    for th in range(1, Ho + 1):
        if Ho % th:
            continue
        m = th * Wo
        if m <= max(target_m, Wo) and m % 8 == 0:
            best = th
    return best if best is not None else Ho


def _pow2_divisor(n, cap=512):
    a = 1
    while n % (a * 2) == 0 and a < cap:
        a *= 2
    return a


def conv_bn_relu(x_nchw, weight_oihw, gamma, beta, running_mean, running_var,
                 *, stride=1, pad=1, eps=1e-5, row_tile=None):
    """ConvBnReLU forward: Conv2d (no bias) + BatchNorm2d (eval, folded) + ReLU."""
    assert stride == 1, "only stride=1 implemented"
    # TODO(synk): general stride support (strided row/col gather) not implemented.
    N, Cin, H, W = x_nchw.shape
    Cout, Cin_w, KH, KW = weight_oihw.shape
    assert Cin == Cin_w

    Hp, Wp = H + 2 * pad, W + 2 * pad
    Ho, Wo = Hp - KH + 1, Wp - KW + 1

    # ---- wrapper-side layout prep (fused into one pass by XLA under jit) ----
    x_nhwc = jnp.transpose(x_nchw, (0, 2, 3, 1)).astype(jnp.bfloat16)
    x_pad = jnp.pad(x_nhwc, ((0, 0), (pad, pad), (pad, pad), (0, 0)))
    # Fold kw taps into the contraction axis.
    x_col = jnp.concatenate(
        [x_pad[:, :, kw:kw + Wo, :] for kw in range(KW)], axis=-1)
    KWCin = KW * Cin
    x_col = x_col.reshape(N, Hp * Wo, KWCin)

    # OIHW -> (KH, KW*Cin, Coutp) bf16; pad Cout to lane-dense multiple of 128.
    Coutp = ((Cout + 127) // 128) * 128
    w_fold = jnp.transpose(weight_oihw, (2, 3, 1, 0)).reshape(KH, KWCin, Cout)
    w_fold = jnp.pad(w_fold, ((0, 0), (0, 0), (0, Coutp - Cout)))
    w_fold = w_fold.astype(jnp.bfloat16)

    # Fold BatchNorm (eval mode) into per-channel scale / bias (f32 epilogue).
    scale = (gamma / jnp.sqrt(running_var + eps)).astype(jnp.float32)
    bias = (beta - running_mean * scale).astype(jnp.float32)
    scale2d = jnp.pad(scale, (0, Coutp - Cout)).reshape(1, Coutp)
    bias2d = jnp.pad(bias, (0, Coutp - Cout)).reshape(1, Coutp)

    # ---- spatial row tiling --------------------------------------------------
    if row_tile is None:
        row_tile = _pick_row_tile(Ho, Wo)
    assert Ho % row_tile == 0
    TH = row_tile
    assert (TH * Wo) % 8 == 0 or TH == Ho, "output tile must be sublane-aligned"
    R = Ho // TH
    row_align = _pow2_divisor(Wo)

    kernel = functools.partial(
        _conv_bn_relu_kernel, TH=TH, Wo=Wo, KH=KH, Coutp=Coutp,
        row_align=row_align)

    # TODO(synk): for very large images, halo-tile the input DMA instead of
    # keeping the whole kw-folded image VMEM-resident per batch item.
    out_flat = pl.pallas_call(
        kernel,
        out_shape=jax.ShapeDtypeStruct((N, Ho * Wo, Coutp), jnp.float32),
        grid_spec=pltpu.PrefetchScalarGridSpec(
            num_scalar_prefetch=0,
            grid=(N, R),
            in_specs=[
                # index_map ignores r -> block stays resident across row tiles.
                pl.BlockSpec((None, Hp * Wo, KWCin), lambda n, r: (n, 0, 0)),
                pl.BlockSpec((KH, KWCin, Coutp), lambda n, r: (0, 0, 0)),
                pl.BlockSpec((1, Coutp), lambda n, r: (0, 0)),
                pl.BlockSpec((1, Coutp), lambda n, r: (0, 0)),
            ],
            out_specs=pl.BlockSpec((None, TH * Wo, Coutp),
                                   lambda n, r: (n, r, 0)),
        ),
        compiler_params=pltpu.CompilerParams(
            dimension_semantics=("parallel", "parallel")),
    )(x_col, w_fold, scale2d, bias2d)

    # strip Cout padding, (N, Ho*Wo, Cout) -> NCHW
    out_nhwc = out_flat[:, :, :Cout].reshape(N, Ho, Wo, Cout)
    return jnp.transpose(out_nhwc, (0, 3, 1, 2))


def _reference(x, w, gamma, beta, mean, var, eps=1e-5):
    y = jax.lax.conv_general_dilated(
        x, w, window_strides=(1, 1), padding=((1, 1), (1, 1)),
        dimension_numbers=("NCHW", "OIHW", "NCHW"))
    y = (y - mean.reshape(1, -1, 1, 1)) / jnp.sqrt(var.reshape(1, -1, 1, 1) + eps)
    y = y * gamma.reshape(1, -1, 1, 1) + beta.reshape(1, -1, 1, 1)
    return jnp.maximum(y, 0.0)


if __name__ == "__main__":
    key = jax.random.PRNGKey(0)
    k_x, k_w, k_g, k_b, k_m, k_v = jax.random.split(key, 6)

    N, Cin, Cout, H, W = 2, 4, 8, 16, 16

    x = jax.random.normal(k_x, (N, Cin, H, W), jnp.float32)
    weight = jax.random.normal(k_w, (Cout, Cin, 3, 3), jnp.float32) * 0.1
    gamma = 1.0 + 0.1 * jax.random.normal(k_g, (Cout,), jnp.float32)
    beta = 0.1 * jax.random.normal(k_b, (Cout,), jnp.float32)
    running_mean = 0.1 * jax.random.normal(k_m, (Cout,), jnp.float32)
    running_var = jnp.abs(jax.random.normal(k_v, (Cout,), jnp.float32)) + 0.5

    # row_tile=8 -> 2 row tiles per image: exercises the spatial grid axis.
    fwd = jax.jit(functools.partial(conv_bn_relu, row_tile=8))
    out = jax.block_until_ready(
        fwd(x, weight, gamma, beta, running_mean, running_var))

    ref = _reference(x, weight, gamma, beta, running_mean, running_var)
    assert out.shape == (N, Cout, H, W)
    # bf16 MXU inputs with f32 accumulation -> loosened tolerance vs f32 ref.
    assert jnp.allclose(out, ref, atol=3e-2, rtol=3e-2), "mismatch vs reference"

    print("KERNEL_OK")
</pallas_src>

<mosaic_0001>
module attributes {stable_mosaic.version = 11 : i64} {
  func.func @_conv_bn_relu_kernel(%arg0: i32, %arg1: i32, %arg2: memref<1x288x12xbf16, #tpu.memory_space<vmem>>, %arg3: memref<3x12x128xbf16, #tpu.memory_space<vmem>>, %arg4: memref<1x128xf32, #tpu.memory_space<vmem>>, %arg5: memref<1x128xf32, #tpu.memory_space<vmem>>, %arg6: memref<1x128x128xf32, #tpu.memory_space<vmem>>) attributes {dimension_semantics = [#tpu.dimension_semantics<parallel>, #tpu.dimension_semantics<parallel>], iteration_bounds = array<i64: 2, 2>, scalar_prefetch = 0 : i64, scratch_operands = 0 : i64, tpu.core_type = #tpu.core_type<tc>, window_params = [{transform_indices = @transform_0, window_bounds = array<i64: 1, 288, 12>}, {pipeline_mode = #tpu.pipeline_mode<synchronous>, transform_indices = @transform_1, window_bounds = array<i64: 3, 12, 128>}, {pipeline_mode = #tpu.pipeline_mode<synchronous>, transform_indices = @transform_2, window_bounds = array<i64: 1, 128>}, {pipeline_mode = #tpu.pipeline_mode<synchronous>, transform_indices = @transform_3, window_bounds = array<i64: 1, 128>}, {transform_indices = @transform_4, window_bounds = array<i64: 1, 128, 128>}]} {
    %c8_i32 = arith.constant 8 : i32
    %0 = arith.muli %arg1, %c8_i32 : i32
    %c0_i32 = arith.constant 0 : i32
    %1 = arith.addi %0, %c0_i32 : i32
    %c16_i32 = arith.constant 16 : i32
    %2 = arith.muli %1, %c16_i32 : i32
    %3 = tpu.assume_multiple %2, 16 : i32
    %c0 = arith.constant 0 : index
    %4 = arith.index_cast %3 : i32 to index
    %c0_0 = arith.constant 0 : index
    %5 = vector.load %arg2[%c0, %4, %c0_0] : memref<1x288x12xbf16, #tpu.memory_space<vmem>>, vector<1x128x12xbf16>
    %6 = vector.shape_cast %5 : vector<1x128x12xbf16> to vector<128x12xbf16>
    %c0_1 = arith.constant 0 : index
    %c0_2 = arith.constant 0 : index
    %c0_3 = arith.constant 0 : index
    %7 = vector.load %arg3[%c0_1, %c0_2, %c0_3] : memref<3x12x128xbf16, #tpu.memory_space<vmem>>, vector<1x12x128xbf16>
    %8 = vector.shape_cast %7 : vector<1x12x128xbf16> to vector<12x128xbf16>
    %cst = arith.constant dense<0.000000e+00> : vector<128x128xf32>
    %9 = tpu.matmul %6, %8, %cst {dimension_numbers = #tpu.dot_dimension_numbers<[1], [0], [0], [1], [0, 0, 1, 1], [], []>} : vector<128x12xbf16>, vector<12x128xbf16>, vector<128x128xf32> -> vector<128x128xf32>
    %c1_i32 = arith.constant 1 : i32
    %10 = arith.addi %0, %c1_i32 : i32
    %c16_i32_4 = arith.constant 16 : i32
    %11 = arith.muli %10, %c16_i32_4 : i32
    %12 = tpu.assume_multiple %11, 16 : i32
    %c0_5 = arith.constant 0 : index
    %13 = arith.index_cast %12 : i32 to index
    %c0_6 = arith.constant 0 : index
    %14 = vector.load %arg2[%c0_5, %13, %c0_6] : memref<1x288x12xbf16, #tpu.memory_space<vmem>>, vector<1x128x12xbf16>
    %15 = vector.shape_cast %14 : vector<1x128x12xbf16> to vector<128x12xbf16>
    %c1 = arith.constant 1 : index
    %c0_7 = arith.constant 0 : index
    %c0_8 = arith.constant 0 : index
    %16 = vector.load %arg3[%c1, %c0_7, %c0_8] : memref<3x12x128xbf16, #tpu.memory_space<vmem>>, vector<1x12x128xbf16>
    %17 = vector.shape_cast %16 : vector<1x12x128xbf16> to vector<12x128xbf16>
    %cst_9 = arith.constant dense<0.000000e+00> : vector<128x128xf32>
    %18 = tpu.matmul %15, %17, %cst_9 {dimension_numbers = #tpu.dot_dimension_numbers<[1], [0], [0], [1], [0, 0, 1, 1], [], []>} : vector<128x12xbf16>, vector<12x128xbf16>, vector<128x128xf32> -> vector<128x128xf32>
    %19 = arith.addf %9, %18 : vector<128x128xf32>
    %c2_i32 = arith.constant 2 : i32
    %20 = arith.addi %0, %c2_i32 : i32
    %c16_i32_10 = arith.constant 16 : i32
    %21 = arith.muli %20, %c16_i32_10 : i32
    %22 = tpu.assume_multiple %21, 16 : i32
    %c0_11 = arith.constant 0 : index
    %23 = arith.index_cast %22 : i32 to index
    %c0_12 = arith.constant 0 : index
    %24 = vector.load %arg2[%c0_11, %23, %c0_12] : memref<1x288x12xbf16, #tpu.memory_space<vmem>>, vector<1x128x12xbf16>
    %25 = vector.shape_cast %24 : vector<1x128x12xbf16> to vector<128x12xbf16>
    %c2 = arith.constant 2 : index
    %c0_13 = arith.constant 0 : index
    %c0_14 = arith.constant 0 : index
    %26 = vector.load %arg3[%c2, %c0_13, %c0_14] : memref<3x12x128xbf16, #tpu.memory_space<vmem>>, vector<1x12x128xbf16>
    %27 = vector.shape_cast %26 : vector<1x12x128xbf16> to vector<12x128xbf16>
    %cst_15 = arith.constant dense<0.000000e+00> : vector<128x128xf32>
    %28 = tpu.matmul %25, %27, %cst_15 {dimension_numbers = #tpu.dot_dimension_numbers<[1], [0], [0], [1], [0, 0, 1, 1], [], []>} : vector<128x12xbf16>, vector<12x128xbf16>, vector<128x128xf32> -> vector<128x128xf32>
    %29 = arith.addf %19, %28 : vector<128x128xf32>
    %c0_16 = arith.constant 0 : index
    %c0_17 = arith.constant 0 : index
    %30 = vector.load %arg4[%c0_16, %c0_17] : memref<1x128xf32, #tpu.memory_space<vmem>>, vector<1x128xf32>
    %31 = vector.broadcast %30 : vector<1x128xf32> to vector<128x128xf32>
    %32 = arith.mulf %29, %31 : vector<128x128xf32>
    %c0_18 = arith.constant 0 : index
    %c0_19 = arith.constant 0 : index
    %33 = vector.load %arg5[%c0_18, %c0_19] : memref<1x128xf32, #tpu.memory_space<vmem>>, vector<1x128xf32>
    %34 = vector.broadcast %33 : vector<1x128xf32> to vector<128x128xf32>
    %35 = arith.addf %32, %34 : vector<128x128xf32>
    %cst_20 = arith.constant 0.000000e+00 : f32
    %36 = vector.broadcast %cst_20 : f32 to vector<128x128xf32>
    %37 = arith.maximumf %35, %36 : vector<128x128xf32>
    %c0_21 = arith.constant 0 : index
    %c0_22 = arith.constant 0 : index
    %c0_23 = arith.constant 0 : index
    %38 = vector.load %arg6[%c0_21, %c0_22, %c0_23] : memref<1x128x128xf32, #tpu.memory_space<vmem>>, vector<1x128x128xf32>
    %39 = vector.shape_cast %38 : vector<1x128x128xf32> to vector<128x128xf32>
    %40 = vector.shape_cast %37 : vector<128x128xf32> to vector<1x128x128xf32>
    tpu.vector_store %arg6[%c0_21, %c0_22, %c0_23], %40 {strides = array<i32>} : memref<1x128x128xf32, #tpu.memory_space<vmem>>, vector<1x128x128xf32>,
    return
  }
  func.func @transform_0(%arg0: i32, %arg1: i32) -> (i32, i32, i32) {
    %c0_i32 = arith.constant 0 : i32
    %c0_i32_0 = arith.constant 0 : i32
    %c0_i32_1 = arith.constant 0 : i32
    return %arg0, %c0_i32, %c0_i32_0 : i32, i32, i32
  }
  func.func @transform_1(%arg0: i32, %arg1: i32) -> (i32, i32, i32) {
    %c0_i32 = arith.constant 0 : i32
    %c0_i32_0 = arith.constant 0 : i32
    %c0_i32_1 = arith.constant 0 : i32
    %c0_i32_2 = arith.constant 0 : i32
    return %c0_i32, %c0_i32_0, %c0_i32_1 : i32, i32, i32
  }
  func.func @transform_2(%arg0: i32, %arg1: i32) -> (i32, i32) {
    %c0_i32 = arith.constant 0 : i32
    %c0_i32_0 = arith.constant 0 : i32
    %c0_i32_1 = arith.constant 0 : i32
    return %c0_i32, %c0_i32_0 : i32, i32
  }
  func.func @transform_3(%arg0: i32, %arg1: i32) -> (i32, i32) {
    %c0_i32 = arith.constant 0 : i32
    %c0_i32_0 = arith.constant 0 : i32
    %c0_i32_1 = arith.constant 0 : i32
    return %c0_i32, %c0_i32_0 : i32, i32
  }
  func.func @transform_4(%arg0: i32, %arg1: i32) -> (i32, i32, i32) {
    %c0_i32 = arith.constant 0 : i32
    %c0_i32_0 = arith.constant 0 : i32
    return %arg0, %arg1, %c0_i32 : i32, i32, i32
  }
}

</mosaic_0001>

<bundles_post_ra>
// kernel: conv_bn_relu.1
= control target key start
LH: loop header
LB: loop body
LE: loop exit
PB: predicated region body
PF: predicated region fallthrough
CT: control target
= control target key end

     0   :  { %s1290_s15 = smov 0   ;;  %s1292_s16 = smov 0   ;;  %s1498_s0 = inlined_call_operand.vmem [shape: bf16[2,288,12], index: 0, kind: input, shape index: {}]   ;;  %s1499_s1 = inlined_call_operand.vmem [shape: bf16[3,12,128], index: 1, kind: input, shape index: {}]   ;;  %s1500_s2 = inlined_call_operand.vmem [shape: f32[1,128], index: 2, kind: input, shape index: {}]   ;;  %s1501_s3 = inlined_call_operand.vmem [shape: f32[1,128], index: 3, kind: input, shape index: {}]   ;;  %s1502_s4 = inlined_call_operand.vmem [shape: f32[2,256,128], index: 4, kind: output, shape index: {}]  }
   0x1   :  { %s1294_s17 = smov 0   ;;  %s1296_s18 = smov 0  }
   0x2   :  { %s1298_s19 = smov 0  }
   0x3 LB: > { %s23_s20 = sadd.s32 1, %s1255_s17  ;;  %s26_s21 = sadd.s32 1, %s1259_s18  ;;  %s1263_s19 = sphi %s1298_s19, %s14_s19   ;;  %s1259_s18 = sphi %s1296_s18, %s1506_s18   ;;  %s1255_s17 = sphi %s1294_s17, %s1505_s17   ;;  %s1251_s16 = sphi %s1292_s16, %s1504_s16   ;;  %s1247_s15 = sphi %s1290_s15, %s1503_s15  }
   0x4   : > { %p24_p0 = scmp.ge.s32.totalorder %s23_s20, 2  ;;  %p993_p1 = scmp.ge.s32.totalorder %s1263_s19, 1 }
   0x5   : > { %p176_p2 = scmp.lt.s32.totalorder %s1263_s19, 5 }
   0x6   : > { %s1508_s20 = smov (%p24_p0, %s23_s20), 0  ;;  %s1510_s21 = smov (!%p24_p0, %s26_s21), %s1259_s18 }
   0x7   : > { %p177_p3 = pnand %p993_p1, %p176_p2  ;;  %p28_p4 = scmp.ge.s32.totalorder %s1510_s21, 2 }
   0x8   : > { %p206_p5 = scmp.lt.s32.totalorder (!%p177_p3), %s1251_s16, 1  ;;  %s1326_s24 = sshll.u32 (!%p177_p3), %s1247_s15, 7 }
   0x9   : > { %s1512_s21 = smov (%p28_p4, %s1510_s21), 0  ;;  %180 = sbr.rel (%p177_p3) target bundleno = 272 (0x110), region = 36 }
   0xa   : > { %s1065_s25 = sadd.s32 (!%p177_p3), 16, %s1326_s24  ;;  %s1067_s7 = sadd.s32 (!%p177_p3), 32, %s1326_s24 }
   0xb   : > { %s248_s28 = sshra.s32 (!%p177_p3), %s1065_s25, 3  ;;  %s224_s11 = sshra.s32 (!%p177_p3), %s1326_s24, 3 }
   0xc   : > { %s1002_s6 = sshll.u32 (!%p177_p3), %s248_s28, 2  ;;  %s613_s13 = sshra.s32 (!%p177_p3), %s1067_s7, 3 }
   0xd   : > { %s1040_s14 = sshll.u32 (!%p177_p3), %s613_s13, 2  ;;  %s1000_s22 = sshll.u32 (!%p177_p3), %s224_s11, 2 }
   0xe   : > { %v1198_v0 = vld [vmem:[%s1499_s1 + $0x8] sm:$0x3f]   ;;  %vm341_vm0 = vcmask 1045504   ;;  %s1514_s16 = smov (!%p206_p5, %s1251_s16), 1  ;;  %v1201_v2 = vld [vmem:[%s1499_s1] sm:$0x3f]  }
   0xf   : > { %1154 = vmatprep.subr.msk.bf16.mxu1 %vm341_vm0, %v1198_v0  ;;  %1153 = vmatprep.subr.msk.bf16.mxu0 %vm341_vm0, %v1198_v0  ;;  %v343_v1 = vsel %vm341_vm0, %v1198_v0, 0  ;;  %v1204_v3 = vld [vmem:[%s1499_s1 + $0x10] sm:$0x3f]   ;;  %s1157_s5 = smul.u32 144, %s1514_s16  ;;  %vm316_vm1 = vcmask 97280   ;;  %v512_v6 = vsel %vm341_vm0, %v1201_v2, 0 }
  0x10   : > { %1152 = vmatpush3.bf16.msra.mxu1 %v343_v1  ;;  %1098 = vmatpush3.bf16.msra.mxu0 %v343_v1  ;;  %v706_v8 = vsel %vm341_vm0, %v1204_v3, 0  ;;  %s995_s25 = sshll.u32 %s1247_s15, 4  ;;  %s996_s26 = sshll.u32 %s1514_s16, 5  ;;  %v1415_v50 = vld [vmem:[%s1500_s2] ss:$0 sm:$0xff] }
  0x11   : > { %1155 = vmatprep.subr.msk.bf16.mxu1 %vm341_vm0, %v1201_v2  ;;  %1156 = vmatprep.subr.msk.bf16.mxu0 %vm341_vm0, %v1204_v3  ;;  %s210_s10 = scalar_lea.vmem %s1498_s0, %s1157_s5  ;;  %p214_p6 = scmp.lt.s32.totalorder %s995_s25, 31  ;;  %v1420_v55 = vld [vmem:[%s1501_s3] ss:$0 sm:$0xff] }
  0x12   : > { %s251_s12 = scalar_lea.vmem %s210_s10, %s1002_s6  ;;  %s1354_s23 = scalar_lea.vmem %s210_s10, %s1040_s14 }
  0x13   : > { %v1199_v4 = vld [vmem:[%s251_s12] sm:$0xff]   ;;  %v1202_v7 = vld [vmem:[%s251_s12 + $0x8] sm:$0xff]   ;;  %v1205_v10 = vld [vmem:[%s251_s12 + $0x10] sm:$0xff]   ;;  %s1357_s24 = scalar_lea.vmem %s210_s10, %s1000_s22  ;;  %s1516_s25 = smov (!%p214_p6, %s995_s25), 31 }
  0x14   : > { %v1200_v5 = vld [vmem:[%s251_s12 + $0x20] sm:$0xff]   ;;  %1099 = vmatprep.mubr.msk.bf16.mxu0 %vm316_vm1, %v1199_v4  ;;  %v1203_v9 = vld [vmem:[%s251_s12 + $0x28] sm:$0xff]   ;;  %v1206_v11 = vld [vmem:[%s251_s12 + $0x30] sm:$0xff]   ;;  %s217_s27 = sadd.s32 %s996_s26, %s1516_s25 }
  0x15   : > { %1107 = vmatprep.mubr.msk.bf16.mxu1 %vm316_vm1, %v1200_v5  ;;  %1100 = vmatmul.mubr.msk.bf16.vlgmr.msra.gmra.mxu0 %vm316_vm1, %v1202_v7  ;;  %v1207_v12 = vld [vmem:[%s251_s12 + $0x18] sm:$0xff]   ;;  %v1210_v14 = vld [vmem:[%s1354_s23] sm:$0xff]   ;;  %v1211_v16 = vld [vmem:[%s1357_s24 + $0x8] sm:$0xff]   ;;  %s997_s16 = sshll.u32 %s217_s27, 3 }
  0x16   : > { %1108 = vmatmul.mubr.msk.bf16.vlgmr.msra.gmra.mxu1 %vm316_vm1, %v1203_v9  ;;  %1134 = vmatpush3.bf16.msra.mxu0 %v706_v8  ;;  %v1208_v13 = vld [vmem:[%s251_s12 + $0x38] sm:$0xff]   ;;  %v1209_v15 = vld [vmem:[%s1357_s24] sm:$0xff]   ;;  %v1212_v17 = vld [vmem:[%s1354_s23 + $0x8] sm:$0xff]   ;;  %s1428_s7 = scalar_lea.vmem %s1502_s4, %s997_s16 }
  0x17   : > { %1116 = vmatpush3.bf16.msra.mxu1 %v512_v6  ;;  %1103 = vmatprep.mubr.msk.bf16.mxu0 %vm316_vm1, %v1205_v10  ;;  %v1214_v18 = vld [vmem:[%s1354_s23 + $0x10] sm:$0xff]   ;;  %v1216_v20 = vld [vmem:[%s1354_s23 + $0x18] sm:$0xff]   ;;  %v1218_v22 = vld [vmem:[%s1354_s23 + $0x20] sm:$0xff]  }
  0x18   : > { %1111 = vmatprep.mubr.msk.bf16.mxu1 %vm316_vm1, %v1206_v11  ;;  %v1213_v19 = vld [vmem:[%s1357_s24 + $0x10] sm:$0xff]   ;;  %v1215_v21 = vld [vmem:[%s1357_s24 + $0x18] sm:$0xff]   ;;  %v1217_v23 = vld [vmem:[%s1357_s24 + $0x20] sm:$0xff]  }
  0x19   : > { %v1220_v24 = vld [vmem:[%s1354_s23 + $0x28] sm:$0xff]   ;;  %v1222_v26 = vld [vmem:[%s1354_s23 + $0x30] sm:$0xff]   ;;  %v1224_v28 = vld [vmem:[%s1354_s23 + $0x38] sm:$0xff]  }
  0x1a   : > { %v1219_v25 = vld [vmem:[%s1357_s24 + $0x28] sm:$0xff]   ;;  %v1221_v27 = vld [vmem:[%s1357_s24 + $0x30] sm:$0xff]   ;;  %v1223_v29 = vld [vmem:[%s1357_s24 + $0x38] sm:$0xff]  }
  0x1d   : > { %1104 = vmatmul.mubr.msk.bf16.gmra.mxu0 %vm316_vm1, %v1207_v12 }
  0x1e   : > { %1112 = vmatmul.mubr.msk.bf16.gmra.mxu1 %vm316_vm1, %v1208_v13  ;;  %1135 = vmatprep.mubr.msk.bf16.mxu0 %vm316_vm1, %v1210_v14 }
  0x1f   : > { %1117 = vmatprep.mubr.msk.bf16.mxu1 %vm316_vm1, %v1209_v15 }
  0x25   : > { %1136 = vmatmul.mubr.msk.bf16.vlgmr.msra.gmra.mxu0 %vm316_vm1, %v1212_v17 }
  0x26   : > { %1118 = vmatmul.mubr.msk.bf16.vlgmr.msra.gmra.mxu1 %vm316_vm1, %v1211_v16  ;;  %1139 = vmatprep.mubr.msk.bf16.mxu0 %vm316_vm1, %v1214_v18 }
  0x27   : > { %1121 = vmatprep.mubr.msk.bf16.mxu1 %vm316_vm1, %v1213_v19 }
  0x2d   : > { %1140 = vmatmul.mubr.msk.bf16.gmra.mxu0 %vm316_vm1, %v1216_v20 }
  0x2e   : > { %1122 = vmatmul.mubr.msk.bf16.gmra.mxu1 %vm316_vm1, %v1215_v21  ;;  %1143 = vmatprep.mubr.msk.bf16.mxu0 %vm316_vm1, %v1218_v22 }
  0x2f   : > { %1125 = vmatprep.mubr.msk.bf16.mxu1 %vm316_vm1, %v1217_v23 }
  0x35   : > { %1144 = vmatmul.mubr.msk.bf16.gmra.mxu0 %vm316_vm1, %v1220_v24 }
  0x36   : > { %1126 = vmatmul.mubr.msk.bf16.gmra.mxu1 %vm316_vm1, %v1219_v25  ;;  %1147 = vmatprep.mubr.msk.bf16.mxu0 %vm316_vm1, %v1222_v26 }
  0x37   : > { %1129 = vmatprep.mubr.msk.bf16.mxu1 %vm316_vm1, %v1221_v27 }
  0x3d   : > { %1148 = vmatmul.mubr.msk.bf16.gmra.mxu0 %vm316_vm1, %v1224_v28 }
  0x3e   : > { %1130 = vmatmul.mubr.msk.bf16.gmra.mxu1 %vm316_vm1, %v1223_v29 }
  0xd5   : > { %v1101_v30 = vpop.f32.mrf.mxu0 }
  0xd6   : > { %v1394_v31 = vpop.f32.mrf.mxu1 }
  0xd7   : > { %v379_v32 = vpop.f32.mrf.mxu0 }
  0xd8   : > { %v1396_v33 = vpop.f32.mrf.mxu1 }
  0xd9   : > { %v1102_v34 = vpop.f32.mrf.mxu0 }
  0xda   : > { %v1398_v35 = vpop.f32.mrf.mxu1 }
  0xdb   : > { %v382_v36 = vpop.f32.mrf.mxu0 }
  0xdc   : > { %v1400_v37 = vpop.f32.mrf.mxu1 }
  0xdd   : > { %v1105_v38 = vpop.f32.mrf.mxu0 }
  0xde   : > { %v1403_v39 = vpop.f32.mrf.mxu1 }
  0xdf   : > { %v395_v40 = vpop.f32.mrf.mxu0 }
  0xe0   : > { %v1405_v41 = vpop.f32.mrf.mxu1 }
  0xe1   : > { %v1106_v42 = vpop.f32.mrf.mxu0 }
  0xe2   : > { %v1407_v43 = vpop.f32.mrf.mxu1 }
  0xe3   : > { %v398_v44 = vpop.f32.mrf.mxu0 }
  0xe4   : > { %v1409_v45 = vpop.f32.mrf.mxu1 }
  0xe5   : > { %v1137_v46 = vpop.f32.mrf.mxu0 }
  0xe6   : > { %v1119_v47 = vpop.f32.mrf.mxu1 }
  0xe7   : > { %v557_v48 = vadd.f32 %v1119_v47, %v1101_v30  ;;  %v742_v49 = vpop.f32.mrf.mxu0 }
  0xe8   : > { %v548_v51 = vpop.f32.mrf.mxu1 }
  0xe9   : > { %v807_v52 = vadd.f32 %v1137_v46, %v557_v48  ;;  %v549_v53 = vadd.f32 %v548_v51, %v379_v32  ;;  %v1138_v54 = vpop.f32.mrf.mxu0 }
  0xea   : > { %v1120_v56 = vpop.f32.mrf.mxu1 }
  0xeb   : > { %v830_v57 = vmul.f32 %v1415_v50, %v807_v52  ;;  %v805_v58 = vadd.f32 %v742_v49, %v549_v53  ;;  %v560_v59 = vadd.f32 %v1120_v56, %v1102_v34  ;;  %v745_v60 = vpop.f32.mrf.mxu0 }
  0xec   : > { %v551_v61 = vpop.f32.mrf.mxu1 }
  0xed   : > { %v853_v62 = vadd.f32 %v1420_v55, %v830_v57  ;;  %v828_v63 = vmul.f32 %v1415_v50, %v805_v58  ;;  %v808_v0 = vadd.f32 %v1138_v54, %v560_v59  ;;  %v552_v1 = vadd.f32 %v551_v61, %v382_v36  ;;  %v1141_v2 = vpop.f32.mrf.mxu0 }
  0xee   : > { %v1123_v3 = vpop.f32.mrf.mxu1 }
  0xef   : > { %v869_v4 = vmax.f32 %v853_v62, 0.0  ;;  %v851_v5 = vadd.f32 %v1420_v55, %v828_v63  ;;  %v831_v6 = vmul.f32 %v1415_v50, %v808_v0  ;;  %v806_v7 = vadd.f32 %v745_v60, %v552_v1  ;;  %v758_v8 = vpop.f32.mrf.mxu0 }
  0xf0   : > { %v573_v9 = vadd.f32 %v1123_v3, %v1105_v38  ;;  %v564_v10 = vpop.f32.mrf.mxu1 }
  0xf1   : > { %885 = vst [vmem:[%s1428_s7 + $0x10] sm:$0xff] %v869_v4  ;;  %v867_v11 = vmax.f32 %v851_v5, 0.0  ;;  %v854_v12 = vadd.f32 %v1420_v55, %v831_v6  ;;  %v829_v13 = vmul.f32 %v1415_v50, %v806_v7  ;;  %v565_v14 = vadd.f32 %v564_v10, %v395_v40  ;;  %v1142_v15 = vpop.f32.mrf.mxu0 }
  0xf2   : > { %v811_v16 = vadd.f32 %v1141_v2, %v573_v9  ;;  %v1124_v17 = vpop.f32.mrf.mxu1 }
  0xf3   : > { %883 = vst [vmem:[%s1428_s7] sm:$0xff] %v867_v11  ;;  %v870_v18 = vmax.f32 %v854_v12, 0.0  ;;  %v852_v19 = vadd.f32 %v1420_v55, %v829_v13  ;;  %v809_v20 = vadd.f32 %v758_v8, %v565_v14  ;;  %v576_v21 = vadd.f32 %v1124_v17, %v1106_v42  ;;  %v761_v22 = vpop.f32.mrf.mxu0 }
  0xf4   : > { %v834_v23 = vmul.f32 %v1415_v50, %v811_v16  ;;  %v567_v24 = vpop.f32.mrf.mxu1 }
  0xf5   : > { %886 = vst [vmem:[%s1428_s7 + $0x18] sm:$0xff] %v870_v18  ;;  %v868_v25 = vmax.f32 %v852_v19, 0.0  ;;  %v832_v26 = vmul.f32 %v1415_v50, %v809_v20  ;;  %v812_v27 = vadd.f32 %v1142_v15, %v576_v21  ;;  %v568_v28 = vadd.f32 %v567_v24, %v398_v44  ;;  %v1145_v29 = vpop.f32.mrf.mxu0 }
  0xf6   : > { %v857_v30 = vadd.f32 %v1420_v55, %v834_v23  ;;  %v1127_v32 = vpop.f32.mrf.mxu1 }
  0xf7   : > { %884 = vst [vmem:[%s1428_s7 + $0x8] sm:$0xff] %v868_v25  ;;  %v855_v34 = vadd.f32 %v1420_v55, %v832_v26  ;;  %v835_v36 = vmul.f32 %v1415_v50, %v812_v27  ;;  %v810_v38 = vadd.f32 %v761_v22, %v568_v28  ;;  %v589_v40 = vadd.f32 %v1127_v32, %v1394_v31  ;;  %v774_v42 = vpop.f32.mrf.mxu0 }
  0xf8   : > { %v873_v46 = vmax.f32 %v857_v30, 0.0  ;;  %v580_v47 = vpop.f32.mrf.mxu1 }
  0xf9   : > { %v871_v48 = vmax.f32 %v855_v34, 0.0  ;;  %v858_v44 = vadd.f32 %v1420_v55, %v835_v36  ;;  %v833_v49 = vmul.f32 %v1415_v50, %v810_v38  ;;  %v815_v51 = vadd.f32 %v1145_v29, %v589_v40  ;;  %v1146_v52 = vpop.f32.mrf.mxu0 }
  0xfa   : > { %889 = vst [vmem:[%s1428_s7 + $0x30] sm:$0xff] %v873_v46  ;;  %v581_v53 = vadd.f32 %v580_v47, %v1396_v33  ;;  %v1128_v54 = vpop.f32.mrf.mxu1 }
  0xfb   : > { %887 = vst [vmem:[%s1428_s7 + $0x20] sm:$0xff] %v871_v48  ;;  %v874_v56 = vmax.f32 %v858_v44, 0.0  ;;  %v856_v31 = vadd.f32 %v1420_v55, %v833_v49  ;;  %v838_v57 = vmul.f32 %v1415_v50, %v815_v51  ;;  %v592_v58 = vadd.f32 %v1128_v54, %v1398_v35  ;;  %v777_v59 = vpop.f32.mrf.mxu0 }
  0xfc   : > { %v813_v60 = vadd.f32 %v774_v42, %v581_v53  ;;  %v583_v61 = vpop.f32.mrf.mxu1 }
  0xfd   : > { %890 = vst [vmem:[%s1428_s7 + $0x38] sm:$0xff] %v874_v56  ;;  %v872_v62 = vmax.f32 %v856_v31, 0.0  ;;  %v861_v63 = vadd.f32 %v1420_v55, %v838_v57  ;;  %v816_v0 = vadd.f32 %v1146_v52, %v592_v58  ;;  %v584_v33 = vadd.f32 %v583_v61, %v1400_v37  ;;  %v1149_v1 = vpop.f32.mrf.mxu0 }
  0xfe   : > { %v836_v2 = vmul.f32 %v1415_v50, %v813_v60  ;;  %v1131_v3 = vpop.f32.mrf.mxu1 }
  0xff   : > { %888 = vst [vmem:[%s1428_s7 + $0x28] sm:$0xff] %v872_v62  ;;  %v877_v4 = vmax.f32 %v861_v63, 0.0  ;;  %v839_v5 = vmul.f32 %v1415_v50, %v816_v0  ;;  %v814_v35 = vadd.f32 %v777_v59, %v584_v33  ;;  %v605_v6 = vadd.f32 %v1131_v3, %v1403_v39  ;;  %v790_v7 = vpop.f32.mrf.mxu0 }
 0x100   : > { %v859_v8 = vadd.f32 %v1420_v55, %v836_v2  ;;  %v596_v9 = vpop.f32.mrf.mxu1 }
 0x101   : > { %893 = vst [vmem:[%s1428_s7 + $0x50] sm:$0xff] %v877_v4  ;;  %v862_v37 = vadd.f32 %v1420_v55, %v839_v5  ;;  %v837_v10 = vmul.f32 %v1415_v50, %v814_v35  ;;  %v819_v11 = vadd.f32 %v1149_v1, %v605_v6  ;;  %v597_v12 = vadd.f32 %v596_v9, %v1405_v41  ;;  %v1150_v15 = vpop.f32.mrf.mxu0 }
 0x102   : > { %v875_v13 = vmax.f32 %v859_v8, 0.0  ;;  %v1132_v14 = vpop.f32.mrf.mxu1 }
 0x103   : > { %v878_v16 = vmax.f32 %v862_v37, 0.0  ;;  %v860_v39 = vadd.f32 %v1420_v55, %v837_v10  ;;  %v842_v17 = vmul.f32 %v1415_v50, %v819_v11  ;;  %v817_v18 = vadd.f32 %v790_v7, %v597_v12  ;;  %v793_v25 = vpop.f32.mrf.mxu0 }
 0x104   : > { %891 = vst [vmem:[%s1428_s7 + $0x40] sm:$0xff] %v875_v13  ;;  %v608_v19 = vadd.f32 %v1132_v14, %v1407_v43  ;;  %v599_v20 = vpop.f32.mrf.mxu1 }
 0x105   : > { %894 = vst [vmem:[%s1428_s7 + $0x58] sm:$0xff] %v878_v16  ;;  %v876_v21 = vmax.f32 %v860_v39, 0.0  ;;  %v865_v41 = vadd.f32 %v1420_v55, %v842_v17  ;;  %v840_v22 = vmul.f32 %v1415_v50, %v817_v18  ;;  %v600_v23 = vadd.f32 %v599_v20, %v1409_v45 }
 0x106   : > { %v820_v24 = vadd.f32 %v1150_v15, %v608_v19 }
 0x107   : > { %892 = vst [vmem:[%s1428_s7 + $0x48] sm:$0xff] %v876_v21  ;;  %v881_v26 = vmax.f32 %v865_v41, 0.0  ;;  %v863_v27 = vadd.f32 %v1420_v55, %v840_v22  ;;  %v818_v28 = vadd.f32 %v793_v25, %v600_v23 }
 0x108   : > { %v843_v43 = vmul.f32 %v1415_v50, %v820_v24 }
 0x109   : > { %897 = vst [vmem:[%s1428_s7 + $0x70] sm:$0xff] %v881_v26  ;;  %v879_v29 = vmax.f32 %v863_v27, 0.0  ;;  %v841_v30 = vmul.f32 %v1415_v50, %v818_v28 }
 0x10a   : > { %v866_v32 = vadd.f32 %v1420_v55, %v843_v43 }
 0x10b   : > { %895 = vst [vmem:[%s1428_s7 + $0x60] sm:$0xff] %v879_v29  ;;  %v864_v45 = vadd.f32 %v1420_v55, %v841_v30 }
 0x10c   : > { %v882_v34 = vmax.f32 %v866_v32, 0.0 }
 0x10d   : > { %v880_v36 = vmax.f32 %v864_v45, 0.0 }
 0x10e   : > { %898 = vst [vmem:[%s1428_s7 + $0x78] sm:$0xff] %v882_v34 }
 0x10f   : > { %896 = vst [vmem:[%s1428_s7 + $0x68] sm:$0xff] %v880_v36 }
 0x110 PF: > { %s14_s19 = sadd.s32 1, %s1263_s19   ;;  %s1503_s15 = smov %s1255_s17 }
 0x111   : > { %p11_p7 = scmp.ge.s32.totalorder %s14_s19, 6   ;;  %s1504_s16 = smov %s1259_s18 }
 0x112   : > { %s1505_s17 = smov %s1508_s20  ;;  %s1506_s18 = smov %s1512_s21 }
 0x113   :  { %13 = sbr.rel (!%p11_p7) target bundleno = 3 (0x3), region = 71 }

</bundles_post_ra>
